<compile_context>
chip_gen: v7x
topology: tpu7x:2x2x1
jax: 0.10.0
libtpu: 0.0.40
codegen_flags: <defaults>
</compile_context>

<pallas_src>
import jax
import jax.numpy as jnp
from jax.experimental import pallas as pl
from jax.experimental.pallas import tpu as pltpu

_LANE = 128
_SUBLANE = 8


def _round_up(x: int, m: int) -> int:
    return ((x + m - 1) // m) * m


def _choose_tile_n(n: int, tile_n_max: int = 512) -> int:
    """Large row tiles (amortize ~0.35us/grid-step), but keep >=2 grid steps
    when there are enough rows so v7x's two TensorCores are both used."""
    n8 = _round_up(max(n, 1), _SUBLANE)
    if n8 <= _SUBLANE:
        return _SUBLANE
    if n8 >= 2 * tile_n_max:
        return tile_n_max
    return min(tile_n_max, _round_up((n8 + 1) // 2, _SUBLANE))


# ----------------------------------------------------------------------------
# Pallas kernel: fused (concat -> matmul -> bias -> relu -> matmul -> bias).
# The concat is expressed as a sum of per-input matmuls into one f32 acc.
# ----------------------------------------------------------------------------
def _make_mlp_kernel(num_inputs: int):
    def kernel(*refs):
        xs = refs[:num_inputs]                       # (tile_n, f_in_i) each
        w1s = refs[num_inputs:2 * num_inputs]        # (f_in_i, f_hid_p) each
        b1_ref, w2_ref, b2_ref, o_ref = refs[2 * num_inputs:]

        # First layer: sum of per-key matmuls == matmul of the concat.
        h = jnp.dot(xs[0][...], w1s[0][...], preferred_element_type=jnp.float32)
        for i in range(1, num_inputs):
            h = h + jnp.dot(xs[i][...], w1s[i][...],
                            preferred_element_type=jnp.float32)
        h = jnp.maximum(h + b1_ref[...], 0.0)        # bias + ReLU in f32

        # Second layer (padded, lane-dense output of width f_out_p = k*128).
        y = jnp.dot(h.astype(w2_ref.dtype), w2_ref[...],
                    preferred_element_type=jnp.float32)
        y = y + b2_ref[...]
        o_ref[...] = y.astype(o_ref.dtype)

    return kernel


def mlp_forward(xs, w1_splits, b1_p, w2_p, b2_p, *, f_out, out_dtype,
                tile_n_max=512):
    """xs: list of (N, f_in_i) tensors (same N).  Weights already padded:
    w1_splits[i]: (f_in_i, f_hid_p), w2_p: (f_hid_p, f_out_p), biases (1, *_p).
    Returns (N, f_out) in `out_dtype`."""
    n = xs[0].shape[0]
    f_hid_p = w2_p.shape[0]
    f_out_p = w2_p.shape[1]
    num_inputs = len(xs)

    tile_n = _choose_tile_n(n, tile_n_max)
    n_pad = _round_up(n, tile_n)
    if n_pad != n:
        # Zero-pad rows once in the wrapper instead of forcing awkward tiles.
        xs = [jnp.pad(x, ((0, n_pad - n), (0, 0))) for x in xs]
    grid = (n_pad // tile_n,)

    in_specs = []
    for x in xs:
        f = x.shape[1]
        # Last dim equals the full array dim, so arbitrary (non-128) widths
        # are legal here; rows are tiled over the grid.
        in_specs.append(pl.BlockSpec((tile_n, f), lambda i: (i, 0)))
    for w in w1_splits:
        in_specs.append(pl.BlockSpec(w.shape, lambda i: (0, 0)))
    in_specs += [
        pl.BlockSpec(b1_p.shape, lambda i: (0, 0)),
        pl.BlockSpec(w2_p.shape, lambda i: (0, 0)),
        pl.BlockSpec(b2_p.shape, lambda i: (0, 0)),
    ]
    out_spec = pl.BlockSpec((tile_n, f_out_p), lambda i: (i, 0))

    # Advisory cost estimate so XLA schedules surrounding ops sensibly.
    f_in_total = sum(int(x.shape[1]) for x in xs)
    flops = 2 * n_pad * (f_in_total * f_hid_p + f_hid_p * f_out_p)
    bytes_in = sum(int(x.size) * x.dtype.itemsize for x in xs)
    bytes_w = (sum(int(w.size) * w.dtype.itemsize for w in w1_splits)
               + int(b1_p.size) * b1_p.dtype.itemsize
               + int(w2_p.size) * w2_p.dtype.itemsize
               + int(b2_p.size) * b2_p.dtype.itemsize)
    bytes_out = n_pad * f_out_p * jnp.dtype(out_dtype).itemsize
    cost = pl.CostEstimate(flops=flops, transcendentals=0,
                           bytes_accessed=bytes_in + bytes_w + bytes_out)

    y_pad = pl.pallas_call(
        _make_mlp_kernel(num_inputs),
        out_shape=jax.ShapeDtypeStruct((n_pad, f_out_p), out_dtype),
        grid_spec=pltpu.PrefetchScalarGridSpec(
            num_scalar_prefetch=0,
            grid=grid,
            in_specs=in_specs,
            out_specs=out_spec,
        ),
        compiler_params=pltpu.CompilerParams(
            dimension_semantics=("parallel",),
            vmem_limit_bytes=32 * 1024 * 1024,
        ),
        cost_estimate=cost,
    )(*xs, *w1_splits, b1_p, w2_p, b2_p)

    # Strip row/lane padding (padded output columns are exactly zero).
    return y_pad[:n, :f_out]


# ----------------------------------------------------------------------------
# Adapter (mirrors PhlowerModuleAdapter.forward semantics).
# ----------------------------------------------------------------------------
class PhlowerModuleAdapterJAX:
    def __init__(self, name, input_keys, output_key, destinations,
                 no_grad, n_nodes, *, param_dtype=jnp.float32,
                 compute_dtype=jnp.float32):
        assert len(n_nodes) == 3, "synthetic core module is a 2-layer MLP"
        self._name = name
        self._input_keys = list(input_keys)
        self._output_key = output_key
        self._destinations = list(destinations)
        self._no_grad = no_grad
        self._n_nodes = list(n_nodes)
        # On v6e/v7x pass compute_dtype=jnp.bfloat16 to halve HBM bytes and
        # double MXU rate (accumulation stays f32). v5e: keep f32.
        self._compute_dtype = compute_dtype

        f_in, f_hid, f_out = n_nodes
        self._f_out = f_out
        f_hid_p = _round_up(f_hid, _LANE)
        f_out_p = _round_up(f_out, _LANE)

        # Deterministic parameter init (synthetic; no checkpoint load).
        k1, k2, k3, k4 = jax.random.split(jax.random.PRNGKey(42), 4)
        self.w1 = (jax.random.normal(k1, (f_in, f_hid), param_dtype)
                   / jnp.sqrt(jnp.asarray(f_in, param_dtype)))
        self.b1 = jax.random.normal(k2, (1, f_hid), param_dtype) * 0.01
        self.w2 = (jax.random.normal(k3, (f_hid, f_out), param_dtype)
                   / jnp.sqrt(jnp.asarray(f_hid, param_dtype)))
        self.b2 = jax.random.normal(k4, (1, f_out), param_dtype) * 0.01

        # Zero-padded, lane-dense parameters for the kernel (padded hidden
        # columns produce relu(0)=0 and padded W2 rows/cols are zero, so the
        # padded output columns are exactly zero -> sliced off in the wrapper).
        self._w1_p = jnp.pad(self.w1, ((0, 0), (0, f_hid_p - f_hid)))
        self._b1_p = jnp.pad(self.b1, ((0, 0), (0, f_hid_p - f_hid))
                             ).astype(jnp.float32)
        self._w2_p = jnp.pad(self.w2, ((0, f_hid_p - f_hid),
                                       (0, f_out_p - f_out)))
        self._b2_p = jnp.pad(self.b2, ((0, 0), (0, f_out_p - f_out))
                             ).astype(jnp.float32)
        # TODO(synk): if n_nodes ever scale to large hidden widths, add a
        # K-tiling grid axis with an accumulator and single-buffer the
        # grid-invariant weights (pipeline_mode) to fit v7x's 64 MiB VMEM.

    # --- metadata accessors mirroring the torch adapter -------------------
    @property
    def name(self):
        return self._name

    def get_destinations(self):
        return self._destinations

    def get_n_nodes(self):
        return self._n_nodes

    def get_display_info(self):
        return f"nn_type: MLP\nn_nodes: {self.get_n_nodes()}"

    def resolve(self, *, parent=None, **kwargs):
        return  # core module needs no reference

    # --- forward -----------------------------------------------------------
    def forward(self, data, *, field_data=None):
        # Select inputs by key.  The concat along the feature axis is fused
        # into the kernel: W1 is split row-wise per input key and the kernel
        # sums the per-key matmuls into one f32 accumulator.
        inputs = [data[key] for key in self._input_keys]
        widths = [int(x.shape[-1]) for x in inputs]
        assert sum(widths) == self._n_nodes[0]

        cd = self._compute_dtype
        offs = [0]
        for w in widths:
            offs.append(offs[-1] + w)
        w1_splits = [self._w1_p[offs[i]:offs[i + 1], :].astype(cd)
                     for i in range(len(inputs))]
        xs = [x.astype(cd) for x in inputs]

        out_dtype = inputs[0].dtype
        result = mlp_forward(xs, w1_splits, self._b1_p,
                             self._w2_p.astype(cd), self._b2_p,
                             f_out=self._f_out, out_dtype=out_dtype)

        if self._no_grad:
            # torch.no_grad() equivalent: block gradients through the layer.
            result = jax.lax.stop_gradient(result)

        return {self._output_key: result}


# ----------------------------------------------------------------------------
# Demo / self-check
# ----------------------------------------------------------------------------
if __name__ == "__main__":
    N_POINTS = 200          # deliberately NOT a tile multiple (tail handling)
    F_IN_A, F_IN_B = 12, 4  # two input collections -> fused concat to 16 feats
    N_NODES = [F_IN_A + F_IN_B, 32, 8]   # MLP widths (in, hidden, out)

    key = jax.random.PRNGKey(0)
    ka, kb = jax.random.split(key)
    data = {
        "velocity": jax.random.normal(ka, (N_POINTS, F_IN_A), jnp.float32),
        "pressure": jax.random.normal(kb, (N_POINTS, F_IN_B), jnp.float32),
    }

    adapter = PhlowerModuleAdapterJAX(
        name="MLP0",
        input_keys=["velocity", "pressure"],
        output_key="mlp0_out",
        destinations=["MLP1"],
        no_grad=True,
        n_nodes=N_NODES,
    )

    out = adapter.forward(data, field_data=None)
    y = jax.block_until_ready(out[adapter._output_key])

    # Reference check against plain JAX (unpadded logical parameters).
    x_ref = jnp.concatenate([data["velocity"], data["pressure"]], axis=-1)
    h_ref = jnp.maximum(x_ref @ adapter.w1 + adapter.b1, 0.0)
    y_ref = h_ref @ adapter.w2 + adapter.b2
    assert y.shape == (N_POINTS, N_NODES[-1])
    assert jnp.allclose(y, y_ref, atol=1e-5, rtol=1e-5)

    print("KERNEL_OK")
</pallas_src>

<mosaic_0001>
module attributes {stable_mosaic.version = 11 : i64} {
  func.func @kernel(%arg0: i32, %arg1: memref<104x12xf32, #tpu.memory_space<vmem>>, %arg2: memref<104x4xf32, #tpu.memory_space<vmem>>, %arg3: memref<12x128xf32, #tpu.memory_space<vmem>>, %arg4: memref<4x128xf32, #tpu.memory_space<vmem>>, %arg5: memref<1x128xf32, #tpu.memory_space<vmem>>, %arg6: memref<128x128xf32, #tpu.memory_space<vmem>>, %arg7: memref<1x128xf32, #tpu.memory_space<vmem>>, %arg8: memref<104x128xf32, #tpu.memory_space<vmem>>) attributes {dimension_semantics = [#tpu.dimension_semantics<parallel>], iteration_bounds = array<i64: 2>, scalar_prefetch = 0 : i64, scratch_operands = 0 : i64, tpu.core_type = #tpu.core_type<tc>, window_params = [{transform_indices = @transform_0, window_bounds = array<i64: 104, 12>}, {transform_indices = @transform_1, window_bounds = array<i64: 104, 4>}, {pipeline_mode = #tpu.pipeline_mode<synchronous>, transform_indices = @transform_2, window_bounds = array<i64: 12, 128>}, {pipeline_mode = #tpu.pipeline_mode<synchronous>, transform_indices = @transform_3, window_bounds = array<i64: 4, 128>}, {pipeline_mode = #tpu.pipeline_mode<synchronous>, transform_indices = @transform_4, window_bounds = array<i64: 1, 128>}, {pipeline_mode = #tpu.pipeline_mode<synchronous>, transform_indices = @transform_5, window_bounds = array<i64: 128, 128>}, {pipeline_mode = #tpu.pipeline_mode<synchronous>, transform_indices = @transform_6, window_bounds = array<i64: 1, 128>}, {transform_indices = @transform_7, window_bounds = array<i64: 104, 128>}]} {
    %c0 = arith.constant 0 : index
    %c0_0 = arith.constant 0 : index
    %0 = vector.load %arg1[%c0, %c0_0] : memref<104x12xf32, #tpu.memory_space<vmem>>, vector<104x12xf32>
    %c0_1 = arith.constant 0 : index
    %c0_2 = arith.constant 0 : index
    %1 = vector.load %arg3[%c0_1, %c0_2] : memref<12x128xf32, #tpu.memory_space<vmem>>, vector<12x128xf32>
    %cst = arith.constant dense<0.000000e+00> : vector<104x128xf32>
    %2 = tpu.matmul %0, %1, %cst {dimension_numbers = #tpu.dot_dimension_numbers<[1], [0], [0], [1], [0, 0, 1, 1], [], []>} : vector<104x12xf32>, vector<12x128xf32>, vector<104x128xf32> -> vector<104x128xf32>
    %c0_3 = arith.constant 0 : index
    %c0_4 = arith.constant 0 : index
    %3 = vector.load %arg2[%c0_3, %c0_4] : memref<104x4xf32, #tpu.memory_space<vmem>>, vector<104x4xf32>
    %c0_5 = arith.constant 0 : index
    %c0_6 = arith.constant 0 : index
    %4 = vector.load %arg4[%c0_5, %c0_6] : memref<4x128xf32, #tpu.memory_space<vmem>>, vector<4x128xf32>
    %cst_7 = arith.constant dense<0.000000e+00> : vector<104x128xf32>
    %5 = tpu.matmul %3, %4, %cst_7 {dimension_numbers = #tpu.dot_dimension_numbers<[1], [0], [0], [1], [0, 0, 1, 1], [], []>} : vector<104x4xf32>, vector<4x128xf32>, vector<104x128xf32> -> vector<104x128xf32>
    %6 = arith.addf %2, %5 : vector<104x128xf32>
    %c0_8 = arith.constant 0 : index
    %c0_9 = arith.constant 0 : index
    %7 = vector.load %arg5[%c0_8, %c0_9] : memref<1x128xf32, #tpu.memory_space<vmem>>, vector<1x128xf32>
    %8 = vector.broadcast %7 : vector<1x128xf32> to vector<104x128xf32>
    %9 = arith.addf %6, %8 : vector<104x128xf32>
    %cst_10 = arith.constant 0.000000e+00 : f32
    %10 = vector.broadcast %cst_10 : f32 to vector<104x128xf32>
    %11 = arith.maximumf %9, %10 : vector<104x128xf32>
    %c0_11 = arith.constant 0 : index
    %c0_12 = arith.constant 0 : index
    %12 = vector.load %arg6[%c0_11, %c0_12] : memref<128x128xf32, #tpu.memory_space<vmem>>, vector<128x128xf32>
    %cst_13 = arith.constant dense<0.000000e+00> : vector<104x128xf32>
    %13 = tpu.matmul %11, %12, %cst_13 {dimension_numbers = #tpu.dot_dimension_numbers<[1], [0], [0], [1], [0, 0, 1, 1], [], []>} : vector<104x128xf32>, vector<128x128xf32>, vector<104x128xf32> -> vector<104x128xf32>
    %c0_14 = arith.constant 0 : index
    %c0_15 = arith.constant 0 : index
    %14 = vector.load %arg7[%c0_14, %c0_15] : memref<1x128xf32, #tpu.memory_space<vmem>>, vector<1x128xf32>
    %15 = vector.broadcast %14 : vector<1x128xf32> to vector<104x128xf32>
    %16 = arith.addf %13, %15 : vector<104x128xf32>
    %c0_16 = arith.constant 0 : index
    %c0_17 = arith.constant 0 : index
    %17 = vector.load %arg8[%c0_16, %c0_17] : memref<104x128xf32, #tpu.memory_space<vmem>>, vector<104x128xf32>
    tpu.vector_store %arg8[%c0_16, %c0_17], %16 {strides = array<i32>} : memref<104x128xf32, #tpu.memory_space<vmem>>, vector<104x128xf32>,
    return
  }
  func.func @transform_0(%arg0: i32) -> (i32, i32) {
    %c0_i32 = arith.constant 0 : i32
    %c0_i32_0 = arith.constant 0 : i32
    return %arg0, %c0_i32 : i32, i32
  }
  func.func @transform_1(%arg0: i32) -> (i32, i32) {
    %c0_i32 = arith.constant 0 : i32
    %c0_i32_0 = arith.constant 0 : i32
    return %arg0, %c0_i32 : i32, i32
  }
  func.func @transform_2(%arg0: i32) -> (i32, i32) {
    %c0_i32 = arith.constant 0 : i32
    %c0_i32_0 = arith.constant 0 : i32
    %c0_i32_1 = arith.constant 0 : i32
    return %c0_i32, %c0_i32_0 : i32, i32
  }
  func.func @transform_3(%arg0: i32) -> (i32, i32) {
    %c0_i32 = arith.constant 0 : i32
    %c0_i32_0 = arith.constant 0 : i32
    %c0_i32_1 = arith.constant 0 : i32
    return %c0_i32, %c0_i32_0 : i32, i32
  }
  func.func @transform_4(%arg0: i32) -> (i32, i32) {
    %c0_i32 = arith.constant 0 : i32
    %c0_i32_0 = arith.constant 0 : i32
    %c0_i32_1 = arith.constant 0 : i32
    return %c0_i32, %c0_i32_0 : i32, i32
  }
  func.func @transform_5(%arg0: i32) -> (i32, i32) {
    %c0_i32 = arith.constant 0 : i32
    %c0_i32_0 = arith.constant 0 : i32
    %c0_i32_1 = arith.constant 0 : i32
    return %c0_i32, %c0_i32_0 : i32, i32
  }
  func.func @transform_6(%arg0: i32) -> (i32, i32) {
    %c0_i32 = arith.constant 0 : i32
    %c0_i32_0 = arith.constant 0 : i32
    %c0_i32_1 = arith.constant 0 : i32
    return %c0_i32, %c0_i32_0 : i32, i32
  }
  func.func @transform_7(%arg0: i32) -> (i32, i32) {
    %c0_i32 = arith.constant 0 : i32
    %c0_i32_0 = arith.constant 0 : i32
    return %arg0, %c0_i32 : i32, i32
  }
}

</mosaic_0001>

<bundles_post_ra>
// kernel: tpu_custom_call.1
= control target key start
LH: loop header
LB: loop body
LE: loop exit
PB: predicated region body
PF: predicated region fallthrough
CT: control target
= control target key end

     0   :  { %12 = vsyncpa [#allocation3], 0  ;;  %s1774_s0 = inlined_call_operand.vmem [shape: f32[208,12], index: 0, kind: input, shape index: {}]   ;;  %s1775_s1 = inlined_call_operand.vmem [shape: f32[208,4], index: 1, kind: input, shape index: {}]   ;;  %s1776_s2 = inlined_call_operand.vmem [shape: f32[12,128], index: 2, kind: input, shape index: {}]   ;;  %s1777_s3 = inlined_call_operand.vmem [shape: f32[4,128], index: 3, kind: input, shape index: {}]   ;;  %s1778_s4 = inlined_call_operand.vmem [shape: f32[1,128], index: 4, kind: input, shape index: {}]   ;;  %s1779_s5 = inlined_call_operand.vmem [shape: f32[128,128], index: 5, kind: input, shape index: {}]   ;;  %s1780_s6 = inlined_call_operand.vmem [shape: f32[1,128], index: 6, kind: input, shape index: {}]   ;;  %s1781_s7 = inlined_call_operand.hbm [shape: f32[208,128], index: 7, kind: output, shape index: {}]  }
   0x1   :  { %14 = vsyncpa [#allocation3 + $0x1], 0  ;;  %s1419_s24 = smov 0   ;;  %s1421_s25 = smov 0  }
   0x2   :  { %s1423_s26 = smov 0   ;;  %s1425_s27 = smov 0  }
   0x3 LB: > { %s1440_s28 = sadd.s32 4294967295, %s1370_s27   ;;  %s965_s29 = sadd.s32 4294967294, %s1370_s27   ;;  %s1370_s27 = sphi %s1425_s27, %s1787_s27   ;;  %s1366_s26 = sphi %s1423_s26, %s1786_s26   ;;  %s1362_s25 = sphi %s1421_s25, %s1785_s25   ;;  %s1358_s24 = sphi %s1419_s24, %s1784_s24  }
   0x4   : > { %s1444_s30 = sadd.s32 1, %s1370_s27   ;;  %s184_s8 = sadd.s32 1, %s1366_s26 }
   0x5   : > { %s181_s9 = ssub.s32 %s1370_s27, %s1444_s30  ;;  %p194_p0 = scmp.ne.s32.totalorder %s1366_s26, %s1362_s25 }
   0x6   : > { %p182_p1 = scmp.eq.s32.totalorder %s181_s9, 0  ;;  %p195_p2 = scmp.eq.s32.totalorder %s1440_s28, 1 }
   0x7   : > { %p200_p3 = scmp.ne.s32.totalorder %s1362_s25, %s1358_s24  ;;  %p201_p4 = scmp.eq.s32.totalorder %s965_s29, 1 }
   0x8   : > { %s1455_s10 = scalar_select %p182_p1, %s1366_s26, %s184_s8  }
   0x9   : > { %p1457_p5 = por %p195_p2, %p194_p0  ;;  %p1461_p6 = por %p201_p4, %p200_p3 }
   0xa   : > { %p968_p7 = scmp.ge.s32.totalorder %s1370_s27, 1  ;;  %p252_p8 = scmp.lt.s32.totalorder %s1370_s27, 3 }
   0xc   : > { %p253_p9 = pnand %p968_p7, %p252_p8 }
   0xd   : > { %v315_v0 = vld [vmem:[%s1776_s2] sm:$0xff] (!%p253_p9)  ;;  %v316_v1 = vld [vmem:[%s1776_s2 + $0x8] sm:$0xf] (!%p253_p9)  ;;  %vm371_vm0 = vcmask (!%p253_p9), 1043456   ;;  %v1372_v2 = vmov (!%p253_p9), 0.0|0.0   ;;  %vm1373_vm1 = vmmov (!%p253_p9), 1  }
   0xe   : > { %256 = sbr.rel (%p253_p9) target bundleno = 521 (0x209), region = 48  ;;  %1218 = vmatprep.subr.bf16.mxu1 (!%p253_p9), %v1372_v2  ;;  %v1219_v3 = vpack.c.bf16 (!%p253_p9), %v316_v1, %v315_v0  ;;  %vm1220_vm2 = vmpackc.low (!%p253_p9), %vm371_vm0, %vm1373_vm1  ;;  %v330_v4 = vld [vmem:[%s1777_s3] sm:$0xf] (!%p253_p9)  ;;  %v1374_v5 = vmov (!%p253_p9), 0.0   ;;  %vm1375_vm3 = vmmov (!%p253_p9), 0   ;;  %v712_v7 = vld [vmem:[%s1779_s5 + $0x8] sm:$0xff] (!%p253_p9) }
   0xf   : > { %s289_s19 = smul.u32 (!%p253_p9), 13, %s1440_s28  ;;  %1063 = vmatprep.subr.mxu0 (!%p253_p9), %v1374_v5  ;;  %1065 = vmatprep.mubr.msk.f32.mxu0 (!%p253_p9), %vm1375_vm3, %v1374_v5  ;;  %v711_v6 = vld [vmem:[%s1779_s5] sm:$0xff] (!%p253_p9)  ;;  %vm331_vm4 = vcmask (!%p253_p9), 31744   ;;  %vm505_vm5 = vcmask (!%p253_p9), 97280   ;;  %v713_v9 = vld [vmem:[%s1779_s5 + $0x10] sm:$0xff] (!%p253_p9)  ;;  %v714_v12 = vld [vmem:[%s1779_s5 + $0x18] sm:$0xff] (!%p253_p9) }
  0x10   : > { %1221 = vmatpush3.bf16.msk.msra.mxu1 (!%p253_p9), %vm1220_vm2, %v1219_v3  ;;  %1064 = vmatpush3.msk.msra.mxu0 (!%p253_p9), %vm371_vm0, %v330_v4  ;;  %v1223_v8 = vpack.c.bf16 (!%p253_p9), %v712_v7, %v711_v6  ;;  %v1226_v15 = vpack.c.bf16 (!%p253_p9), %v714_v12, %v713_v9  ;;  %v715_v16 = vld [vmem:[%s1779_s5 + $0x20] sm:$0xff] (!%p253_p9)  ;;  %v716_v17 = vld [vmem:[%s1779_s5 + $0x28] sm:$0xff] (!%p253_p9)  ;;  %v717_v21 = vld [vmem:[%s1779_s5 + $0x30] sm:$0xff] (!%p253_p9)  ;;  %s286_s21 = sand.u32 (!%p253_p9), 1, %s1362_s25   ;;  %s1004_s9 = smul.u32 (!%p253_p9), 1664, %s1440_s28 }
  0x11   : > { %p290_p10 = scmp.lt.s32.totalorder (!%p253_p9), %s289_s19, 25  ;;  %1108 = vmatprep.mubr.msk.f32.mxu1 (!%p253_p9), %vm1375_vm3, %v1374_v5  ;;  %1222 = vmatprep.subr.bf16.mxu0 (!%p253_p9), %v1372_v2  ;;  %v1229_v20 = vpack.c.bf16 (!%p253_p9), %v716_v17, %v715_v16  ;;  %v718_v22 = vld [vmem:[%s1779_s5 + $0x38] sm:$0xff] (!%p253_p9)  ;;  %v719_v26 = vld [vmem:[%s1779_s5 + $0x40] sm:$0xff] (!%p253_p9)  ;;  %v720_v27 = vld [vmem:[%s1779_s5 + $0x48] sm:$0xff] (!%p253_p9)  ;;  %s1262_s22 = smul.u32 (!%p253_p9), 104, %s286_s21 }
  0x12   : > { %1246 = vmatprep.subr.bf16.mxu1 (!%p253_p9), %v1372_v2  ;;  %v1232_v25 = vpack.c.bf16 (!%p253_p9), %v718_v22, %v717_v21  ;;  %v1235_v30 = vpack.c.bf16 (!%p253_p9), %v720_v27, %v719_v26  ;;  %v721_v31 = vld [vmem:[%s1779_s5 + $0x50] sm:$0xff] (!%p253_p9)  ;;  %v722_v32 = vld [vmem:[%s1779_s5 + $0x58] sm:$0xff] (!%p253_p9)  ;;  %v723_v50 = vld [vmem:[%s1779_s5 + $0x60] sm:$0xff] (!%p253_p9)  ;;  %s1733_s28 = scalar_lea.sflag (!%p253_p9), [#allocation3], %s286_s21  ;;  %s1376_s18 = smov (!%p253_p9), [#allocation2]  }
  0x13   : > { %v1238_v35 = vpack.c.bf16 (!%p253_p9), %v722_v32, %v721_v31  ;;  %v724_v51 = vld [vmem:[%s1779_s5 + $0x68] sm:$0xff] (!%p253_p9)  ;;  %v725_v53 = vld [vmem:[%s1779_s5 + $0x70] sm:$0xff] (!%p253_p9)  ;;  %v726_v54 = vld [vmem:[%s1779_s5 + $0x78] sm:$0xff] (!%p253_p9)  ;;  %s1707_s8 = scalar_lea.vmem (!%p253_p9), [#allocation2], %s1262_s22 }
  0x14   : > { %v1241_v52 = vpack.c.bf16 (!%p253_p9), %v724_v51, %v723_v50  ;;  %v1244_v55 = vpack.c.bf16 (!%p253_p9), %v726_v54, %v725_v53  ;;  %v1664_v58 = vld [vmem:[%s1778_s4] ss:$0 sm:$0xff] (!%p253_p9)  ;;  %s891_s14 = sshll.u32 (!%p253_p9), %s1707_s8, 4  ;;  %s1728_s14 = int_to_ptr.vmem [resolvable:$true] %s891_s14 }
  0x15   : > { %s1789_s19 = smov (!%p290_p10, %s289_s19), 25  ;;  %s1308_s17 = scalar_lea.vmem %s1728_s14, 1664 }
  0x16   : > { %s969_s29 = sshll.u32 %s1789_s19, 3  ;;  %p1309_p11 = scmp.ne.s32.totalorder %s1728_s14, %s1308_s17 }
  0x17   : > { %s1494_s13 = scalar_lea.vmem %s1775_s1, %s969_s29  ;;  %s1499_s16 = scalar_lea.vmem %s1774_s0, %s969_s29 }
  0x18   : > { %v317_v10 = vld [vmem:[%s1494_s13] sm:$0xff]  ;;  %v318_v13 = vld [vmem:[%s1494_s13 + $0x8] sm:$0xff]  ;;  %v319_v18 = vld [vmem:[%s1494_s13 + $0x10] sm:$0xff]  ;;  %p1310_p12 = pnand %p1309_p11, %p1457_p5  ;;  %s1312_s19 = sshll.u32 %s1376_s18, 4  ;;  %s1313_s19 = int_to_ptr.vmem [resolvable:$false] %s1312_s19 }
  0x19   : > { %v302_v11 = vld [vmem:[%s1499_s16] sm:$0xff]  ;;  %1066 = vmatmul.mubr.msk.f32.vlgmr.msra.gmra.mrb[0].mxu0 %vm331_vm4, %v317_v10  ;;  %v303_v14 = vld [vmem:[%s1499_s16 + $0x8] sm:$0xff]  ;;  %v304_v19 = vld [vmem:[%s1499_s16 + $0x10] sm:$0xff]  ;;  %s1314_s20 = scalar_lea.vmem %s1313_s19, 3328  ;;  %p1315_p0 = scmp.lt.s32.totalorder %s1728_s14, %s1313_s19 }
  0x1a   : > { %1109 = vmatmul.mubr.msk.f32.vlgmr.msra.gmra.mrb[0].mxu1 %vm505_vm5, %v302_v11  ;;  %1068 = vmatprep.mubr.msk.f32.mxu0 %vm1375_vm3, %v1374_v5  ;;  %v320_v23 = vld [vmem:[%s1494_s13 + $0x18] sm:$0xff]  ;;  %v321_v28 = vld [vmem:[%s1494_s13 + $0x20] sm:$0xff]  ;;  %v322_v33 = vld [vmem:[%s1494_s13 + $0x28] sm:$0xff]  ;;  %p1311_p13 = pneg %p1310_p12  ;;  %p1316_p1 = scmp.lt.s32.totalorder %s1314_s20, %s1308_s17 }
  0x1b   : > { %1111 = vmatprep.mubr.msk.f32.mxu1 %vm1375_vm3, %v1374_v5  ;;  %1224 = vmatpush3.bf16.msra.mxu0 %v1223_v8  ;;  %v305_v24 = vld [vmem:[%s1499_s16 + $0x18] sm:$0xff]  ;;  %v306_v29 = vld [vmem:[%s1499_s16 + $0x20] sm:$0xff]  ;;  %v307_v34 = vld [vmem:[%s1499_s16 + $0x28] sm:$0xff] }
  0x1c   : > { %1254 = vmatpush3.bf16.msra.mxu1 %v1223_v8  ;;  %1225 = vmatprep.subr.bf16.mxu0 %v1372_v2  ;;  %v323_v36 = vld [vmem:[%s1494_s13 + $0x30] sm:$0xff]  ;;  %v324_v38 = vld [vmem:[%s1494_s13 + $0x38] sm:$0xff]  ;;  %v325_v40 = vld [vmem:[%s1494_s13 + $0x40] sm:$0xff]  ;;  %p1317_p2 = por %p1316_p1, %p1315_p0 }
  0x1d   : > { %1247 = vmatprep.subr.bf16.mxu1 %v1372_v2  ;;  %1069 = vmatmul.mubr.msk.f32.gmra.mrb[2].mxu0 %vm331_vm4, %v318_v13  ;;  %v308_v37 = vld [vmem:[%s1499_s16 + $0x30] sm:$0xff]  ;;  %v309_v39 = vld [vmem:[%s1499_s16 + $0x38] sm:$0xff]  ;;  %v310_v41 = vld [vmem:[%s1499_s16 + $0x40] sm:$0xff] }
  0x1e   : > { %1112 = vmatmul.mubr.msk.f32.gmra.mrb[2].mxu1 %vm505_vm5, %v303_v14  ;;  %1071 = vmatprep.mubr.msk.f32.mxu0 %vm1375_vm3, %v1374_v5  ;;  %v326_v42 = vld [vmem:[%s1494_s13 + $0x48] sm:$0xff]  ;;  %v327_v44 = vld [vmem:[%s1494_s13 + $0x50] sm:$0xff]  ;;  %v328_v46 = vld [vmem:[%s1494_s13 + $0x58] sm:$0xff]  ;;  %p1318_p3 = pnand %p1317_p2, %p1311_p13 }
  0x1f   : > { %1114 = vmatprep.mubr.msk.f32.mxu1 %vm1375_vm3, %v1374_v5  ;;  %1227 = vmatpush3.bf16.msra.mxu0 %v1226_v15  ;;  %v311_v43 = vld [vmem:[%s1499_s16 + $0x48] sm:$0xff]  ;;  %v312_v45 = vld [vmem:[%s1499_s16 + $0x50] sm:$0xff]  ;;  %v313_v47 = vld [vmem:[%s1499_s16 + $0x58] sm:$0xff] }
  0x20   : > { %1255 = vmatpush3.bf16.msra.mxu1 %v1226_v15  ;;  %1228 = vmatprep.subr.bf16.mxu0 %v1372_v2  ;;  %v329_v48 = vld [vmem:[%s1494_s13 + $0x60] sm:$0xff] }
  0x21   : > { %1248 = vmatprep.subr.bf16.mxu1 %v1372_v2  ;;  %1072 = vmatmul.mubr.msk.f32.gmra.mrb[4].mxu0 %vm331_vm4, %v319_v18  ;;  %v314_v49 = vld [vmem:[%s1499_s16 + $0x60] sm:$0xff]  ;;  %s1726_s16 = scalar_lea.hbm %s1781_s7, %s1004_s9 }
  0x22   : > { %1115 = vmatmul.mubr.msk.f32.gmra.mrb[4].mxu1 %vm505_vm5, %v304_v19  ;;  %1074 = vmatprep.mubr.msk.f32.mxu0 %vm1375_vm3, %v1374_v5 }
  0x23   : > { %1117 = vmatprep.mubr.msk.f32.mxu1 %vm1375_vm3, %v1374_v5  ;;  %1230 = vmatpush3.bf16.msra.mxu0 %v1229_v20 }
  0x24   : > { %1256 = vmatpush3.bf16.msra.mxu1 %v1229_v20  ;;  %1231 = vmatprep.subr.bf16.mxu0 %v1372_v2 }
  0x25   : > { %1249 = vmatprep.subr.bf16.mxu1 %v1372_v2  ;;  %1075 = vmatmul.mubr.msk.f32.gmra.mrb[6].mxu0 %vm331_vm4, %v320_v23 }
  0x26   : > { %1118 = vmatmul.mubr.msk.f32.gmra.mrb[6].mxu1 %vm505_vm5, %v305_v24  ;;  %1077 = vmatprep.mubr.msk.f32.mxu0 %vm1375_vm3, %v1374_v5 }
  0x27   : > { %1120 = vmatprep.mubr.msk.f32.mxu1 %vm1375_vm3, %v1374_v5  ;;  %1233 = vmatpush3.bf16.msra.mxu0 %v1232_v25 }
  0x28   : > { %1257 = vmatpush3.bf16.msra.mxu1 %v1232_v25  ;;  %1234 = vmatprep.subr.bf16.mxu0 %v1372_v2 }
  0x29   : > { %1250 = vmatprep.subr.bf16.mxu1 %v1372_v2  ;;  %1078 = vmatmul.mubr.msk.f32.gmra.mrb[8].mxu0 %vm331_vm4, %v321_v28 }
  0x2a   : > { %1121 = vmatmul.mubr.msk.f32.gmra.mrb[8].mxu1 %vm505_vm5, %v306_v29  ;;  %1080 = vmatprep.mubr.msk.f32.mxu0 %vm1375_vm3, %v1374_v5 }
  0x2b   : > { %1123 = vmatprep.mubr.msk.f32.mxu1 %vm1375_vm3, %v1374_v5  ;;  %1236 = vmatpush3.bf16.msra.mxu0 %v1235_v30 }
  0x2c   : > { %1258 = vmatpush3.bf16.msra.mxu1 %v1235_v30  ;;  %1237 = vmatprep.subr.bf16.mxu0 %v1372_v2 }
  0x2d   : > { %1251 = vmatprep.subr.bf16.mxu1 %v1372_v2  ;;  %1081 = vmatmul.mubr.msk.f32.gmra.mrb[10].mxu0 %vm331_vm4, %v322_v33 }
  0x2e   : > { %1124 = vmatmul.mubr.msk.f32.gmra.mrb[10].mxu1 %vm505_vm5, %v307_v34  ;;  %1083 = vmatprep.mubr.msk.f32.mxu0 %vm1375_vm3, %v1374_v5 }
  0x2f   : > { %1126 = vmatprep.mubr.msk.f32.mxu1 %vm1375_vm3, %v1374_v5  ;;  %1239 = vmatpush3.bf16.msra.mxu0 %v1238_v35 }
  0x30   : > { %1259 = vmatpush3.bf16.msra.mxu1 %v1238_v35  ;;  %1240 = vmatprep.subr.bf16.mxu0 %v1372_v2 }
  0x31   : > { %1252 = vmatprep.subr.bf16.mxu1 %v1372_v2  ;;  %1084 = vmatmul.mubr.msk.f32.gmra.mrb[12].mxu0 %vm331_vm4, %v323_v36 }
  0x32   : > { %1127 = vmatmul.mubr.msk.f32.gmra.mrb[12].mxu1 %vm505_vm5, %v308_v37  ;;  %1086 = vmatprep.mubr.msk.f32.mxu0 %vm1375_vm3, %v1374_v5 }
  0x33   : > { %1129 = vmatprep.mubr.msk.f32.mxu1 %vm1375_vm3, %v1374_v5  ;;  %1242 = vmatpush3.bf16.msra.mxu0 %v1241_v52 }
  0x34   : > { %1260 = vmatpush3.bf16.msra.mxu1 %v1241_v52  ;;  %1243 = vmatprep.subr.bf16.mxu0 %v1372_v2 }
  0x35   : > { %1087 = vmatmul.mubr.msk.f32.gmra.mrb[14].mxu0 %vm331_vm4, %v324_v38  ;;  %1253 = vmatprep.subr.bf16.mxu1 %v1372_v2 }
  0x36   : > { %1130 = vmatmul.mubr.msk.f32.gmra.mrb[14].mxu1 %vm505_vm5, %v309_v39  ;;  %1089 = vmatprep.mubr.msk.f32.mxu0 %vm1375_vm3, %v1374_v5 }
  0x37   : > { %1132 = vmatprep.mubr.msk.f32.mxu1 %vm1375_vm3, %v1374_v5  ;;  %1245 = vmatpush3.bf16.msra.mxu0 %v1244_v55 }
  0x38   : > { %1261 = vmatpush3.bf16.msra.mxu1 %v1244_v55 }
  0x39   : > { %1090 = vmatmul.mubr.msk.f32.gmra.mrb[16].mxu0 %vm331_vm4, %v325_v40 }
  0x3a   : > { %1133 = vmatmul.mubr.msk.f32.gmra.mrb[16].mxu1 %vm505_vm5, %v310_v41  ;;  %1092 = vmatprep.mubr.msk.f32.mxu0 %vm1375_vm3, %v1374_v5 }
  0x3b   : > { %1135 = vmatprep.mubr.msk.f32.mxu1 %vm1375_vm3, %v1374_v5 }
  0x3d   : > { %1093 = vmatmul.mubr.msk.f32.gmra.mrb[18].mxu0 %vm331_vm4, %v326_v42 }
  0x3e   : > { %1136 = vmatmul.mubr.msk.f32.gmra.mrb[18].mxu1 %vm505_vm5, %v311_v43  ;;  %1095 = vmatprep.mubr.msk.f32.mxu0 %vm1375_vm3, %v1374_v5 }
  0x3f   : > { %1138 = vmatprep.mubr.msk.f32.mxu1 %vm1375_vm3, %v1374_v5 }
  0x41   : > { %1096 = vmatmul.mubr.msk.f32.gmra.mrb[20].mxu0 %vm331_vm4, %v327_v44 }
  0x42   : > { %1139 = vmatmul.mubr.msk.f32.gmra.mrb[20].mxu1 %vm505_vm5, %v312_v45  ;;  %1098 = vmatprep.mubr.msk.f32.mxu0 %vm1375_vm3, %v1374_v5 }
  0x43   : > { %1141 = vmatprep.mubr.msk.f32.mxu1 %vm1375_vm3, %v1374_v5 }
  0x45   : > { %1099 = vmatmul.mubr.msk.f32.gmra.mrb[22].mxu0 %vm331_vm4, %v328_v46 }
  0x46   : > { %1142 = vmatmul.mubr.msk.f32.gmra.mrb[22].mxu1 %vm505_vm5, %v313_v47  ;;  %1101 = vmatprep.mubr.msk.f32.mxu0 %vm1375_vm3, %v1374_v5 }
  0x47   : > { %1144 = vmatprep.mubr.msk.f32.mxu1 %vm1375_vm3, %v1374_v5 }
  0x49   : > { %1102 = vmatmul.mubr.msk.f32.gmra.mrb[24].mxu0 %vm331_vm4, %v329_v48 }
  0x4a   : > { %1145 = vmatmul.mubr.msk.f32.gmra.mrb[24].mxu1 %vm505_vm5, %v314_v49  ;;  %1179 = vmatprep.mubr.msk.f32.mxu0 %vm1375_vm3, %v1374_v5 }
  0x4b   : > { %1200 = vmatprep.mubr.msk.f32.mxu1 %vm1375_vm3, %v1374_v5 }
  0xec   : > { %v441_v56 = vpop.f32.mrb[0].mxu0 }
  0xed   : > { %v614_v57 = vpop.f32.mrb[0].mxu1  ;;  %v1067_v60 = vpop.f32.mrb[1].mxu0 }
  0xee   : > { %v615_v59 = vadd.f32 %v614_v57, %v441_v56  ;;  %v1110_v61 = vpop.f32.mrb[1].mxu1 }
  0xf0   : > { %v685_v62 = vadd.f32 %v1664_v58, %v615_v59  ;;  %v446_v63 = vpop.f32.mrb[2].mxu0 }
  0xf1   : > { %v619_v0 = vpop.f32.mrb[2].mxu1  ;;  %v1070_v2 = vpop.f32.mrb[3].mxu0 }
  0xf2   : > { %v698_v1 = vmax.f32 %v685_v62, 0.0  ;;  %v620_v3 = vadd.f32 %v619_v0, %v446_v63  ;;  %v1113_v4 = vpop.f32.mrb[3].mxu1 }
  0xf4   : > { %v686_v6 = vadd.f32 %v1664_v58, %v620_v3  ;;  %1180 = vmatmul.mubr.f32.vlgmr.msra.gmra.mrb[26].mxu0 %v698_v1  ;;  %v451_v7 = vpop.f32.mrb[4].mxu0 }
  0xf5   : > { %v624_v8 = vpop.f32.mrb[4].mxu1  ;;  %1182 = vmatprep.mubr.msk.f32.mxu0 %vm1375_vm3, %v1374_v5  ;;  %v1073_v11 = vpop.f32.mrb[5].mxu0 }
  0xf6   : > { %v699_v9 = vmax.f32 %v686_v6, 0.0  ;;  %v625_v10 = vadd.f32 %v624_v8, %v451_v7  ;;  %v1116_v12 = vpop.f32.mrb[5].mxu1 }
  0xf8   : > { %v687_v13 = vadd.f32 %v1664_v58, %v625_v10  ;;  %1183 = vmatmul.mubr.f32.gmra.mrb[28].mxu0 %v699_v9  ;;  %v456_v14 = vpop.f32.mrb[6].mxu0 }
  0xf9   : > { %v629_v15 = vpop.f32.mrb[6].mxu1  ;;  %1185 = vmatprep.mubr.msk.f32.mxu0 %vm1375_vm3, %v1374_v5  ;;  %v1076_v18 = vpop.f32.mrb[7].mxu0 }
  0xfa   : > { %v700_v16 = vmax.f32 %v687_v13, 0.0  ;;  %v630_v17 = vadd.f32 %v629_v15, %v456_v14  ;;  %v1119_v19 = vpop.f32.mrb[7].mxu1 }
  0xfc   : > { %v688_v20 = vadd.f32 %v1664_v58, %v630_v17  ;;  %1186 = vmatmul.mubr.f32.gmra.mrb[30].mxu0 %v700_v16  ;;  %v461_v21 = vpop.f32.mrb[8].mxu0 }
  0xfd   : > { %v634_v22 = vpop.f32.mrb[8].mxu1  ;;  %1188 = vmatprep.mubr.msk.f32.mxu0 %vm1375_vm3, %v1374_v5  ;;  %v1079_v25 = vpop.f32.mrb[9].mxu0 }
  0xfe   : > { %v701_v23 = vmax.f32 %v688_v20, 0.0  ;;  %v635_v24 = vadd.f32 %v634_v22, %v461_v21  ;;  %v1122_v26 = vpop.f32.mrb[9].mxu1 }
 0x100   : > { %v689_v27 = vadd.f32 %v1664_v58, %v635_v24  ;;  %1189 = vmatmul.mubr.f32.gmra.mrb[32].mxu0 %v701_v23  ;;  %v466_v28 = vpop.f32.mrb[10].mxu0  ;;  %v1000_v23 = vld [vmem:[%s1780_s6] ss:$0 sm:$0xff] }
 0x101   : > { %v639_v29 = vpop.f32.mrb[10].mxu1  ;;  %1191 = vmatprep.mubr.msk.f32.mxu0 %vm1375_vm3, %v1374_v5  ;;  %v1082_v32 = vpop.f32.mrb[11].mxu0 }
 0x102   : > { %v702_v30 = vmax.f32 %v689_v27, 0.0  ;;  %v640_v31 = vadd.f32 %v639_v29, %v466_v28  ;;  %v1125_v33 = vpop.f32.mrb[11].mxu1 }
 0x104   : > { %v690_v34 = vadd.f32 %v1664_v58, %v640_v31  ;;  %1192 = vmatmul.mubr.f32.gmra.mrb[34].mxu0 %v702_v30  ;;  %v471_v35 = vpop.f32.mrb[12].mxu0 }
 0x105   : > { %v644_v36 = vpop.f32.mrb[12].mxu1  ;;  %1194 = vmatprep.mubr.msk.f32.mxu0 %vm1375_vm3, %v1374_v5  ;;  %v1085_v39 = vpop.f32.mrb[13].mxu0 }
 0x106   : > { %v703_v37 = vmax.f32 %v690_v34, 0.0  ;;  %v645_v38 = vadd.f32 %v644_v36, %v471_v35  ;;  %v1128_v40 = vpop.f32.mrb[13].mxu1 }
 0x108   : > { %v691_v41 = vadd.f32 %v1664_v58, %v645_v38  ;;  %1195 = vmatmul.mubr.f32.gmra.mrb[36].mxu0 %v703_v37  ;;  %v476_v42 = vpop.f32.mrb[14].mxu0 }
 0x109   : > { %v649_v43 = vpop.f32.mrb[14].mxu1  ;;  %1197 = vmatprep.mubr.msk.f32.mxu0 %vm1375_vm3, %v1374_v5  ;;  %v1088_v46 = vpop.f32.mrb[15].mxu0 }
 0x10a   : > { %v704_v44 = vmax.f32 %v691_v41, 0.0  ;;  %v650_v45 = vadd.f32 %v649_v43, %v476_v42  ;;  %v1131_v47 = vpop.f32.mrb[15].mxu1 }
 0x10c   : > { %v692_v48 = vadd.f32 %v1664_v58, %v650_v45  ;;  %1198 = vmatmul.mubr.f32.gmra.mrb[38].mxu0 %v704_v44  ;;  %v481_v49 = vpop.f32.mrb[16].mxu0 }
 0x10d   : > { %v654_v50 = vpop.f32.mrb[16].mxu1  ;;  %v1091_v53 = vpop.f32.mrb[17].mxu0 }
 0x10e   : > { %v705_v51 = vmax.f32 %v692_v48, 0.0  ;;  %v655_v52 = vadd.f32 %v654_v50, %v481_v49  ;;  %v1134_v54 = vpop.f32.mrb[17].mxu1 }
 0x110   : > { %v693_v55 = vadd.f32 %v1664_v58, %v655_v52  ;;  %1201 = vmatmul.mubr.f32.vlgmr.msra.gmra.mrb[26].mxu1 %v705_v51  ;;  %v486_v56 = vpop.f32.mrb[18].mxu0 }
 0x111   : > { %v659_v57 = vpop.f32.mrb[18].mxu1  ;;  %1203 = vmatprep.mubr.msk.f32.mxu1 %vm1375_vm3, %v1374_v5  ;;  %v1094_v61 = vpop.f32.mrb[19].mxu0 }
 0x112   : > { %v706_v59 = vmax.f32 %v693_v55, 0.0  ;;  %v660_v60 = vadd.f32 %v659_v57, %v486_v56  ;;  %v1137_v62 = vpop.f32.mrb[19].mxu1 }
 0x114   : > { %v694_v63 = vadd.f32 %v1664_v58, %v660_v60  ;;  %1204 = vmatmul.mubr.f32.gmra.mrb[28].mxu1 %v706_v59  ;;  %v491_v0 = vpop.f32.mrb[20].mxu0 }
 0x115   : > { %v664_v1 = vpop.f32.mrb[20].mxu1  ;;  %1206 = vmatprep.mubr.msk.f32.mxu1 %vm1375_vm3, %v1374_v5  ;;  %v1097_v4 = vpop.f32.mrb[21].mxu0 }
 0x116   : > { %v707_v3 = vmax.f32 %v694_v63, 0.0  ;;  %v665_v2 = vadd.f32 %v664_v1, %v491_v0  ;;  %v1140_v6 = vpop.f32.mrb[21].mxu1 }
 0x118   : > { %v695_v7 = vadd.f32 %v1664_v58, %v665_v2  ;;  %1207 = vmatmul.mubr.f32.gmra.mrb[30].mxu1 %v707_v3  ;;  %v496_v8 = vpop.f32.mrb[22].mxu0 }
 0x119   : > { %v669_v9 = vpop.f32.mrb[22].mxu1  ;;  %1209 = vmatprep.mubr.msk.f32.mxu1 %vm1375_vm3, %v1374_v5  ;;  %v1100_v12 = vpop.f32.mrb[23].mxu0 }
 0x11a   : > { %v708_v10 = vmax.f32 %v695_v7, 0.0  ;;  %v670_v11 = vadd.f32 %v669_v9, %v496_v8  ;;  %v1143_v13 = vpop.f32.mrb[23].mxu1 }
 0x11c   : > { %v696_v14 = vadd.f32 %v1664_v58, %v670_v11  ;;  %1210 = vmatmul.mubr.f32.gmra.mrb[32].mxu1 %v708_v10  ;;  %v501_v15 = vpop.f32.mrb[24].mxu0 }
 0x11d   : > { %v674_v16 = vpop.f32.mrb[24].mxu1  ;;  %1212 = vmatprep.mubr.msk.f32.mxu1 %vm1375_vm3, %v1374_v5  ;;  %v1103_v19 = vpop.f32.mrb[25].mxu0 }
 0x11e   : > { %v709_v17 = vmax.f32 %v696_v14, 0.0  ;;  %v675_v18 = vadd.f32 %v674_v16, %v501_v15  ;;  %v1146_v20 = vpop.f32.mrb[25].mxu1 }
 0x120   : > { %v697_v21 = vadd.f32 %v1664_v58, %v675_v18  ;;  %1213 = vmatmul.mubr.f32.gmra.mrb[34].mxu1 %v709_v17 }
 0x121   : > { %1215 = vmatprep.mubr.msk.f32.mxu1 %vm1375_vm3, %v1374_v5 }
 0x122   : > { %v710_v22 = vmax.f32 %v697_v21, 0.0 }
 0x124   : > { %1216 = vmatmul.mubr.f32.gmra.mrb[36].mxu1 %v710_v22 }
 0x1c7   : > { %v800_v24 = vpop.f32.mrb[26].mxu0 }
 0x1c8   : > { %v801_v25 = vadd.f32 %v1000_v23, %v800_v24  ;;  %v1181_v26 = vpop.f32.mrb[27].mxu0 }
 0x1ca   : > { %864 = vst [vmem:[%s1707_s8] sm:$0xff] %v801_v25 }
 0x1cb   : > { %v805_v5 = vpop.f32.mrb[28].mxu0 }
 0x1cc   : > { %v806_v58 = vadd.f32 %v1000_v23, %v805_v5  ;;  %v1184_v27 = vpop.f32.mrb[29].mxu0 }
 0x1ce   : > { %865 = vst [vmem:[%s1707_s8 + $0x8] sm:$0xff] %v806_v58 }
 0x1cf   : > { %v810_v28 = vpop.f32.mrb[30].mxu0 }
 0x1d0   : > { %v811_v29 = vadd.f32 %v1000_v23, %v810_v28  ;;  %v1187_v30 = vpop.f32.mrb[31].mxu0 }
 0x1d2   : > { %866 = vst [vmem:[%s1707_s8 + $0x10] sm:$0xff] %v811_v29 }
 0x1d3   : > { %v815_v31 = vpop.f32.mrb[32].mxu0 }
 0x1d4   : > { %v816_v32 = vadd.f32 %v1000_v23, %v815_v31  ;;  %v1190_v33 = vpop.f32.mrb[33].mxu0 }
 0x1d6   : > { %867 = vst [vmem:[%s1707_s8 + $0x18] sm:$0xff] %v816_v32 }
 0x1d7   : > { %v820_v34 = vpop.f32.mrb[34].mxu0 }
 0x1d8   : > { %v821_v35 = vadd.f32 %v1000_v23, %v820_v34  ;;  %v1193_v36 = vpop.f32.mrb[35].mxu0 }
 0x1da   : > { %868 = vst [vmem:[%s1707_s8 + $0x20] sm:$0xff] %v821_v35 }
 0x1db   : > { %v825_v37 = vpop.f32.mrb[36].mxu0 }
 0x1dc   : > { %v826_v38 = vadd.f32 %v1000_v23, %v825_v37  ;;  %v1196_v39 = vpop.f32.mrb[37].mxu0 }
 0x1de   : > { %869 = vst [vmem:[%s1707_s8 + $0x28] sm:$0xff] %v826_v38 }
 0x1df   : > { %v830_v40 = vpop.f32.mrb[38].mxu0 }
 0x1e0   : > { %v831_v41 = vadd.f32 %v1000_v23, %v830_v40  ;;  %v1199_v42 = vpop.f32.mrb[39].mxu0 }
 0x1e2   : > { %870 = vst [vmem:[%s1707_s8 + $0x30] sm:$0xff] %v831_v41 }
 0x1e3   : > { %v835_v43 = vpop.f32.mrb[26].mxu1 }
 0x1e4   : > { %v836_v44 = vadd.f32 %v1000_v23, %v835_v43  ;;  %v1202_v45 = vpop.f32.mrb[27].mxu1 }
 0x1e6   : > { %871 = vst [vmem:[%s1707_s8 + $0x38] sm:$0xff] %v836_v44 }
 0x1e7   : > { %v840_v46 = vpop.f32.mrb[28].mxu1 }
 0x1e8   : > { %v841_v47 = vadd.f32 %v1000_v23, %v840_v46  ;;  %v1205_v48 = vpop.f32.mrb[29].mxu1 }
 0x1ea   : > { %872 = vst [vmem:[%s1707_s8 + $0x40] sm:$0xff] %v841_v47 }
 0x1eb   : > { %v845_v49 = vpop.f32.mrb[30].mxu1 }
 0x1ec   : > { %v846_v50 = vadd.f32 %v1000_v23, %v845_v49  ;;  %v1208_v51 = vpop.f32.mrb[31].mxu1 }
 0x1ee   : > { %873 = vst [vmem:[%s1707_s8 + $0x48] sm:$0xff] %v846_v50 }
 0x1ef   : > { %v850_v52 = vpop.f32.mrb[32].mxu1 }
 0x1f0   : > { %v851_v53 = vadd.f32 %v1000_v23, %v850_v52  ;;  %v1211_v54 = vpop.f32.mrb[33].mxu1 }
 0x1f2   : > { %874 = vst [vmem:[%s1707_s8 + $0x50] sm:$0xff] %v851_v53 }
 0x1f3   : > { %v855_v55 = vpop.f32.mrb[34].mxu1 }
 0x1f4   : > { %v856_v56 = vadd.f32 %v1000_v23, %v855_v55  ;;  %v1214_v57 = vpop.f32.mrb[35].mxu1 }
 0x1f6   : > { %875 = vst [vmem:[%s1707_s8 + $0x58] sm:$0xff] %v856_v56 }
 0x1f7   : > { %v860_v59 = vpop.f32.mrb[36].mxu1 }
 0x1f8   : > { %v861_v60 = vadd.f32 %v1000_v23, %v860_v59  ;;  %v1217_v61 = vpop.f32.mrb[37].mxu1 }
 0x1fa   : > { %876 = vst [vmem:[%s1707_s8 + $0x60] sm:$0xff] %v861_v60 }
 0x1fb   : > { %1321 = shalt.err (!%p1318_p3)
}
 0x1fc   : > { %s1322_s21 = scalar_lea.hbm %s1726_s16, 1664  ;;  %s1326_s29 = scalar_lea.hbm %s1781_s7, 3328 }
 0x1fd   : > { %p1323_p4 = scmp.ne.s32.totalorder %s1726_s16, %s1322_s21  ;;  %p1327_p9 = scmp.lt.u32.totalorder %s1726_s16, %s1781_s7 }
 0x1fe   : > { %p1328_p10 = scmp.lt.u32.totalorder %s1326_s29, %s1322_s21  ;;  %p1330_p12 = scmp.lt.u32.totalorder %s1322_s21, %s1726_s16 }
 0x1ff   : > { %p1324_p7 = pnand %p1323_p4, %p1457_p5 }
 0x200   : > { %p1329_p11 = por %p1328_p10, %p1327_p9 }
 0x201   : > { %p1325_p8 = pneg %p1324_p7 }
 0x202   : > { %p1331_p13 = por %p1330_p12, %p1329_p11 }
 0x204   : > { %p1332_p0 = pnand %p1331_p13, %p1325_p8 }
 0x206   : > { %1335 = shalt.err (!%p1332_p0)
}
 0x207   : > { %s1377_s15 = smov 128   ;;  %s1378_s13 = smov 8  }
 0x208   : > { %1263 = dma.vmem_to_hbm [thread:$0]  (%p1457_p5), %s1728_s14, 1664, %s1726_s16, %s1733_s28, %s1377_s15, %s1377_s15, %s1378_s13  }
 0x209 PF: > { %p1269_p1 = scmp.ge.s32.totalorder %s1370_s27, 2  ;;  %s906_s17 = sand.u32 1, %s1358_s24  }
 0x20a   : > { %s907_s18 = scalar_lea.sflag [#allocation3], %s906_s17 }
 0x20b   : > { %p1266_p2 = pnand %p1269_p1, %p1461_p6 }
 0x20d   : > { %1353 = dma.done.wait (!%p1266_p2), %s907_s18, 1664  }
 0x20e   : > { %1355 = vsyncadd (!%p1266_p2), %s907_s18, 4294965632  ;;  %p17_p3 = scmp.ge.s32.totalorder %s1444_s30, 4   ;;  %s1784_s24 = smov %s1362_s25 }
 0x20f   : > { %s1785_s25 = smov %s1366_s26  ;;  %s1786_s26 = smov %s1455_s10 }
 0x210   : > { %s1787_s27 = smov %s1444_s30  ;;  %19 = sbr.rel (!%p17_p3) target bundleno = 3 (0x3), region = 86 }
 0x217   :  { %912 = vsyncpa [#allocation3], 1 }
 0x218   :  { %914 = vsyncpa [#allocation3 + $0x1], 1 }

</bundles_post_ra>
